<compile_context>
chip_gen: v7x
topology: tpu7x:2x2x1
jax: 0.10.0
libtpu: 0.0.40
codegen_flags: <defaults>
</compile_context>

<pallas_src>
import functools

import jax
import jax.numpy as jnp
from jax import lax
from jax.experimental import pallas as pl
from jax.experimental.pallas import tpu as pltpu


def _round_up(x, m):
    return ((x + m - 1) // m) * m


def _vmem_capacity_bytes():
    """Best-effort physical-VMEM query with a conservative fallback."""
    try:
        info = pltpu.get_tpu_info()
        for attr in ("vmem_capacity_bytes", "vmem_bytes", "vmem_size_bytes"):
            v = getattr(info, attr, None)
            if v:
                return int(v)
    except Exception:
        pass
    return 64 * 1024 * 1024  # v7x per-TC size; safe lower bound for v5e/v6e


def _sdpa_kernel(q_ref, k_ref, v_ref, mask_ref, ctx_ref, attn_ref, *, scale):
    # q_ref: (1, tq, D), k_ref/v_ref: (1, Lk, D), mask_ref: (1, tq, Lk) int8
    q = q_ref[0]            # [tq, D]  native dtype (MXU-friendly operands)
    k = k_ref[0]            # [Lk, D]
    v = v_ref[0]            # [Lk, D]
    m = mask_ref[0]         # [tq, Lk] int8, nonzero = masked

    # Fold 1/sqrt(D) into Q when that does not change operand precision
    # (tq*D VPU mults instead of tq*Lk); otherwise scale the f32 scores.
    if q.dtype == jnp.float32:
        q = q * jnp.float32(scale)
        post_scale = None
    else:
        post_scale = jnp.float32(scale)

    # scores = Q @ K^T; contract the last axes directly so no transposed copy
    # of K is materialized before the MXU; accumulate in f32.
    scores = lax.dot_general(
        q, k,
        dimension_numbers=(((1,), (1,)), ((), ())),
        preferred_element_type=jnp.float32,
    )
    if post_scale is not None:
        scores = scores * post_scale

    # masked_fill_(attn_mask, -1e9)
    scores = jnp.where(m != 0, jnp.float32(-1e9), scores)

    # numerically-stable softmax; row-wise reciprocal + broadcast multiply
    s_max = jnp.max(scores, axis=-1, keepdims=True)
    e = jnp.exp(scores - s_max)
    denom = jnp.sum(e, axis=-1, keepdims=True)
    attn_f32 = e * pl.reciprocal(denom)

    # Compute the low-precision attn tile once; reuse it for P@V and (when the
    # dtypes match) for the attn writeback, avoiding a second full-tile cast.
    p = attn_f32.astype(v.dtype)
    ctx = jnp.dot(p, v, preferred_element_type=jnp.float32)

    if attn_ref.dtype == v.dtype:
        attn_ref[0] = p
    else:
        attn_ref[0] = attn_f32.astype(attn_ref.dtype)
    ctx_ref[0] = ctx.astype(ctx_ref.dtype)


def scaled_dot_product_attention(Q, K, V, attn_mask, *, block_q=128,
                                 attn_dtype=None):
    """Pallas equivalent of ScaledDotProductAttention.forward.

    Q: [B, H, Lq, D], K/V: [B, H, Lk, D],
    attn_mask: [B, H, Lq, Lk] or head-broadcast [B, 1, Lq, Lk]
               (bool/int, nonzero = masked).
    attn_dtype: dtype of the returned attention matrix (default Q.dtype;
                pass jnp.bfloat16 to halve the dominant HBM writeback).
    Returns (context [B, H, Lq, D], attn [B, H, Lq, Lk]).
    """
    B, H, Lq, D = Q.shape
    Lk = K.shape[2]
    scale = 1.0 / (float(D) ** 0.5)
    out_dtype = Q.dtype
    attn_dtype = jnp.dtype(out_dtype if attn_dtype is None else attn_dtype)

    # Fuse batch & head into one leading grid axis.
    BH = B * H
    q3 = Q.reshape(BH, Lq, D)
    k3 = K.reshape(BH, Lk, D)
    v3 = V.reshape(BH, Lk, D)

    # Keep head-broadcast masks un-materialized: H× less mask HBM traffic.
    mask_is_bcast = (attn_mask.shape[1] == 1) and H > 1
    if mask_is_bcast:
        m3 = attn_mask.reshape(B, Lq, Lk).astype(jnp.int8)
    else:
        m3 = jnp.broadcast_to(attn_mask, (B, H, Lq, Lk)) \
                .reshape(BH, Lq, Lk).astype(jnp.int8)

    # Query tile: multiple of 32 (f32 sublane=8, bf16=16, int8 mask=32); pad
    # Lq to a tile multiple instead of falling back to a full-Lq block.
    tq = max(32, min(_round_up(block_q, 32), _round_up(Lq, 32)))
    Lq_pad = _round_up(Lq, tq)
    if Lq_pad != Lq:
        q3 = jnp.pad(q3, ((0, 0), (0, Lq_pad - Lq), (0, 0)))
        m3 = jnp.pad(m3, ((0, 0), (0, Lq_pad - Lq), (0, 0)))
    grid = (BH, Lq_pad // tq)

    # Explicit VMEM budget from the actual block sizes (with f32-temporary
    # headroom), clamped to a safe fraction of physical VMEM.
    q_bytes = jnp.dtype(out_dtype).itemsize
    attn_bytes = attn_dtype.itemsize
    kv_block = Lk * D * q_bytes                       # one K (or V) block
    cap = _vmem_capacity_bytes()
    # Single-buffer K/V only if double-buffering them would eat >25% of VMEM
    # (they change block index only once per bh, so the exposed fetch is rare).
    single_buffer_kv = (2 * 2 * kv_block) > (cap // 4)
    kv_bufs = 1 if single_buffer_kv else 2
    est = (2 * tq * D * q_bytes                       # Q blocks
           + 2 * kv_bufs * kv_block                   # K + V blocks
           + 2 * tq * Lk                              # int8 mask blocks
           + 2 * tq * D * q_bytes                     # ctx out blocks
           + 2 * tq * Lk * attn_bytes                 # attn out blocks
           + 4 * tq * Lk * 4)                         # f32 temporaries headroom
    vmem_limit = int(min(max(2 * est, 32 * 1024 * 1024), int(0.75 * cap)))

    kv_map = lambda bh, qi: (bh, 0, 0)
    if single_buffer_kv:
        k_spec = pl.BlockSpec((1, Lk, D), kv_map, pipeline_mode=pl.Buffered(1))
        v_spec = pl.BlockSpec((1, Lk, D), kv_map, pipeline_mode=pl.Buffered(1))
    else:
        k_spec = pl.BlockSpec((1, Lk, D), kv_map)
        v_spec = pl.BlockSpec((1, Lk, D), kv_map)

    if mask_is_bcast:
        mask_spec = pl.BlockSpec((1, tq, Lk), lambda bh, qi: (bh // H, qi, 0))
    else:
        mask_spec = pl.BlockSpec((1, tq, Lk), lambda bh, qi: (bh, qi, 0))

    kernel = functools.partial(_sdpa_kernel, scale=scale)

    ctx3, attn3 = pl.pallas_call(
        kernel,
        out_shape=(
            jax.ShapeDtypeStruct((BH, Lq_pad, D), out_dtype),
            jax.ShapeDtypeStruct((BH, Lq_pad, Lk), attn_dtype),
        ),
        grid_spec=pltpu.PrefetchScalarGridSpec(
            num_scalar_prefetch=0,
            grid=grid,
            in_specs=[
                pl.BlockSpec((1, tq, D), lambda bh, qi: (bh, qi, 0)),   # Q tile
                k_spec,                                                 # K (full Lk)
                v_spec,                                                 # V (full Lk)
                mask_spec,                                              # mask tile
            ],
            out_specs=(
                pl.BlockSpec((1, tq, D), lambda bh, qi: (bh, qi, 0)),   # context
                pl.BlockSpec((1, tq, Lk), lambda bh, qi: (bh, qi, 0)),  # attn (lane-dense)
            ),
        ),
        compiler_params=pltpu.CompilerParams(
            # both axes independent -> shard across TensorCores
            dimension_semantics=("parallel", "parallel"),
            vmem_limit_bytes=vmem_limit,
        ),
    )(q3, k3, v3, m3)

    ctx3 = ctx3[:, :Lq]
    attn3 = attn3[:, :Lq]
    return ctx3.reshape(B, H, Lq, D), attn3.reshape(B, H, Lq, Lk)


def _reference(Q, K, V, attn_mask):
    D = Q.shape[-1]
    scores = jnp.einsum("bhqd,bhkd->bhqk", Q, K) / jnp.sqrt(jnp.float32(D))
    scores = jnp.where(attn_mask, jnp.float32(-1e9), scores)
    attn = jax.nn.softmax(scores, axis=-1)
    ctx = jnp.einsum("bhqk,bhkd->bhqd", attn, V)
    return ctx, attn


if __name__ == "__main__":
    key = jax.random.PRNGKey(0)
    B, H, Lq, Lk, D = 2, 2, 8, 8, 32  # QKVdim = 32

    kq, kk, kv, km, kb = jax.random.split(key, 5)
    Q = jax.random.normal(kq, (B, H, Lq, D), dtype=jnp.float32)
    K = jax.random.normal(kk, (B, H, Lk, D), dtype=jnp.float32)
    V = jax.random.normal(kv, (B, H, Lk, D), dtype=jnp.float32)

    # 1) full per-head boolean attention mask (True = masked position)
    attn_mask = jax.random.bernoulli(km, p=0.25, shape=(B, H, Lq, Lk))
    context, attn = scaled_dot_product_attention(Q, K, V, attn_mask)
    jax.block_until_ready((context, attn))
    ref_ctx, ref_attn = _reference(Q, K, V, attn_mask)
    assert jnp.allclose(context, ref_ctx, atol=1e-5, rtol=1e-5)
    assert jnp.allclose(attn, ref_attn, atol=1e-5, rtol=1e-5)

    # 2) head-broadcast mask path ([B,1,Lq,Lk]) — mask block reused across heads
    bcast_mask = jax.random.bernoulli(kb, p=0.25, shape=(B, 1, Lq, Lk))
    context2, attn2 = scaled_dot_product_attention(Q, K, V, bcast_mask)
    jax.block_until_ready((context2, attn2))
    ref_ctx2, ref_attn2 = _reference(Q, K, V, bcast_mask)
    assert jnp.allclose(context2, ref_ctx2, atol=1e-5, rtol=1e-5)
    assert jnp.allclose(attn2, ref_attn2, atol=1e-5, rtol=1e-5)

    print("KERNEL_OK")
</pallas_src>

<mosaic_0001>
module attributes {stable_mosaic.version = 11 : i64} {
  func.func @_sdpa_kernel(%arg0: i32, %arg1: i32, %arg2: memref<1x32x32xf32, #tpu.memory_space<vmem>>, %arg3: memref<1x8x32xf32, #tpu.memory_space<vmem>>, %arg4: memref<1x8x32xf32, #tpu.memory_space<vmem>>, %arg5: memref<1x32x8xi8, #tpu.memory_space<vmem>>, %arg6: memref<1x32x32xf32, #tpu.memory_space<vmem>>, %arg7: memref<1x32x8xf32, #tpu.memory_space<vmem>>) attributes {dimension_semantics = [#tpu.dimension_semantics<parallel>, #tpu.dimension_semantics<parallel>], iteration_bounds = array<i64: 4, 1>, scalar_prefetch = 0 : i64, scratch_operands = 0 : i64, tpu.core_type = #tpu.core_type<tc>, window_params = [{transform_indices = @transform_0, window_bounds = array<i64: 1, 32, 32>}, {transform_indices = @transform_1, window_bounds = array<i64: 1, 8, 32>}, {transform_indices = @transform_2, window_bounds = array<i64: 1, 8, 32>}, {transform_indices = @transform_3, window_bounds = array<i64: 1, 32, 8>}, {transform_indices = @transform_4, window_bounds = array<i64: 1, 32, 32>}, {transform_indices = @transform_5, window_bounds = array<i64: 1, 32, 8>}]} {
    %c0 = arith.constant 0 : index
    %c0_0 = arith.constant 0 : index
    %c0_1 = arith.constant 0 : index
    %0 = vector.load %arg2[%c0, %c0_0, %c0_1] : memref<1x32x32xf32, #tpu.memory_space<vmem>>, vector<1x32x32xf32>
    %1 = vector.shape_cast %0 : vector<1x32x32xf32> to vector<32x32xf32>
    %c0_2 = arith.constant 0 : index
    %c0_3 = arith.constant 0 : index
    %c0_4 = arith.constant 0 : index
    %2 = vector.load %arg3[%c0_2, %c0_3, %c0_4] : memref<1x8x32xf32, #tpu.memory_space<vmem>>, vector<1x8x32xf32>
    %3 = vector.shape_cast %2 : vector<1x8x32xf32> to vector<8x32xf32>
    %c0_5 = arith.constant 0 : index
    %c0_6 = arith.constant 0 : index
    %c0_7 = arith.constant 0 : index
    %4 = vector.load %arg4[%c0_5, %c0_6, %c0_7] : memref<1x8x32xf32, #tpu.memory_space<vmem>>, vector<1x8x32xf32>
    %5 = vector.shape_cast %4 : vector<1x8x32xf32> to vector<8x32xf32>
    %c0_8 = arith.constant 0 : index
    %c0_9 = arith.constant 0 : index
    %c0_10 = arith.constant 0 : index
    %6 = vector.load %arg5[%c0_8, %c0_9, %c0_10] : memref<1x32x8xi8, #tpu.memory_space<vmem>>, vector<1x32x8xi8>
    %7 = vector.shape_cast %6 : vector<1x32x8xi8> to vector<32x8xi8>
    %cst = arith.constant 0.176776692 : f32
    %8 = vector.broadcast %cst : f32 to vector<32x32xf32>
    %9 = arith.mulf %1, %8 : vector<32x32xf32>
    %cst_11 = arith.constant dense<0.000000e+00> : vector<32x8xf32>
    %10 = tpu.matmul %9, %3, %cst_11 {dimension_numbers = #tpu.dot_dimension_numbers<[1], [1], [0], [0], [0, 0, 1, 0], [], []>} : vector<32x32xf32>, vector<8x32xf32>, vector<32x8xf32> -> vector<32x8xf32>
    %c0_i8 = arith.constant 0 : i8
    %11 = vector.broadcast %c0_i8 : i8 to vector<32x8xi8>
    %12 = arith.cmpi ne, %7, %11 : vector<32x8xi8>
    %cst_12 = arith.constant -1.000000e+09 : f32
    %13 = vector.broadcast %cst_12 : f32 to vector<32x8xf32>
    %14 = arith.select %12, %13, %10 : vector<32x8xi1>, vector<32x8xf32>
    %cst_13 = arith.constant dense<0xFF800000> : vector<32xf32>
    %15 = vector.multi_reduction <maximumf>, %14, %cst_13 [1] : vector<32x8xf32> to vector<32xf32>
    %16 = vector.shape_cast %15 : vector<32xf32> to vector<32x1xf32>
    %17 = vector.broadcast %16 : vector<32x1xf32> to vector<32x8xf32>
    %18 = arith.subf %14, %17 : vector<32x8xf32>
    %19 = math.exp %18 : vector<32x8xf32>
    %cst_14 = arith.constant dense<0.000000e+00> : vector<32xf32>
    %20 = vector.multi_reduction <add>, %19, %cst_14 [1] : vector<32x8xf32> to vector<32xf32>
    %21 = vector.shape_cast %20 : vector<32xf32> to vector<32x1xf32>
    %22 = tpu.reciprocal %21 : vector<32x1xf32> -> vector<32x1xf32>
    %23 = vector.broadcast %22 : vector<32x1xf32> to vector<32x8xf32>
    %24 = arith.mulf %19, %23 : vector<32x8xf32>
    %cst_15 = arith.constant dense<0.000000e+00> : vector<32x32xf32>
    %25 = tpu.matmul %24, %5, %cst_15 {dimension_numbers = #tpu.dot_dimension_numbers<[1], [0], [0], [1], [0, 0, 1, 1], [], []>} : vector<32x8xf32>, vector<8x32xf32>, vector<32x32xf32> -> vector<32x32xf32>
    %c0_16 = arith.constant 0 : index
    %c0_17 = arith.constant 0 : index
    %c0_18 = arith.constant 0 : index
    %26 = vector.load %arg7[%c0_16, %c0_17, %c0_18] : memref<1x32x8xf32, #tpu.memory_space<vmem>>, vector<1x32x8xf32>
    %27 = vector.shape_cast %26 : vector<1x32x8xf32> to vector<32x8xf32>
    %28 = vector.shape_cast %24 : vector<32x8xf32> to vector<1x32x8xf32>
    tpu.vector_store %arg7[%c0_16, %c0_17, %c0_18], %28 {strides = array<i32>} : memref<1x32x8xf32, #tpu.memory_space<vmem>>, vector<1x32x8xf32>,
    %c0_19 = arith.constant 0 : index
    %c0_20 = arith.constant 0 : index
    %c0_21 = arith.constant 0 : index
    %29 = vector.load %arg6[%c0_19, %c0_20, %c0_21] : memref<1x32x32xf32, #tpu.memory_space<vmem>>, vector<1x32x32xf32>
    %30 = vector.shape_cast %29 : vector<1x32x32xf32> to vector<32x32xf32>
    %31 = vector.shape_cast %25 : vector<32x32xf32> to vector<1x32x32xf32>
    tpu.vector_store %arg6[%c0_19, %c0_20, %c0_21], %31 {strides = array<i32>} : memref<1x32x32xf32, #tpu.memory_space<vmem>>, vector<1x32x32xf32>,
    return
  }
  func.func @transform_0(%arg0: i32, %arg1: i32) -> (i32, i32, i32) {
    %c0_i32 = arith.constant 0 : i32
    %c0_i32_0 = arith.constant 0 : i32
    return %arg0, %arg1, %c0_i32 : i32, i32, i32
  }
  func.func @transform_1(%arg0: i32, %arg1: i32) -> (i32, i32, i32) {
    %c0_i32 = arith.constant 0 : i32
    %c0_i32_0 = arith.constant 0 : i32
    %c0_i32_1 = arith.constant 0 : i32
    return %arg0, %c0_i32, %c0_i32_0 : i32, i32, i32
  }
  func.func @transform_2(%arg0: i32, %arg1: i32) -> (i32, i32, i32) {
    %c0_i32 = arith.constant 0 : i32
    %c0_i32_0 = arith.constant 0 : i32
    %c0_i32_1 = arith.constant 0 : i32
    return %arg0, %c0_i32, %c0_i32_0 : i32, i32, i32
  }
  func.func @transform_3(%arg0: i32, %arg1: i32) -> (i32, i32, i32) {
    %c0_i32 = arith.constant 0 : i32
    %c0_i32_0 = arith.constant 0 : i32
    return %arg0, %arg1, %c0_i32 : i32, i32, i32
  }
  func.func @transform_4(%arg0: i32, %arg1: i32) -> (i32, i32, i32) {
    %c0_i32 = arith.constant 0 : i32
    %c0_i32_0 = arith.constant 0 : i32
    return %arg0, %arg1, %c0_i32 : i32, i32, i32
  }
  func.func @transform_5(%arg0: i32, %arg1: i32) -> (i32, i32, i32) {
    %c0_i32 = arith.constant 0 : i32
    %c0_i32_0 = arith.constant 0 : i32
    return %arg0, %arg1, %c0_i32 : i32, i32, i32
  }
}

</mosaic_0001>

<bundles_post_ra>
// kernel: tpu_custom_call.1
= control target key start
LH: loop header
LB: loop body
LE: loop exit
PB: predicated region body
PF: predicated region fallthrough
CT: control target
= control target key end

     0   :  { %s1469_s0 = inlined_call_operand.hbm [shape: f32[4,32,32], index: 0, kind: input, shape index: {}]   ;;  %s1470_s1 = inlined_call_operand.vmem [shape: f32[4,8,32], index: 1, kind: input, shape index: {}]   ;;  %s1471_s2 = inlined_call_operand.hbm [shape: f32[4,8,32], index: 2, kind: input, shape index: {}]   ;;  %s1472_s3 = inlined_call_operand.vmem [shape: s8[4,32,8], index: 3, kind: input, shape index: {}]   ;;  %s1473_s4 = inlined_call_operand.hbm [shape: f32[4,32,32], index: 4, kind: output, shape index: {0}]   ;;  %s1474_s5 = inlined_call_operand.vmem [shape: f32[4,32,8], index: 5, kind: output, shape index: {1}]  }
   0x1   :  { %1477 = sst [smem:[#allocation11_spill]] %s1469_s0 }
   0x2   :  { %11 = vsyncpa [#allocation3], 0 }
   0x3   :  { %13 = vsyncpa [#allocation3 + $0x1], 0 }
   0x4   :  { %14 = vsyncpa [#allocation6], 0 }
   0x5   :  { %16 = vsyncpa [#allocation6 + $0x1], 0 }
   0x6   :  { %17 = vsyncpa [#allocation4], 0 }
   0x7   :  { %19 = vsyncpa [#allocation4 + $0x1], 0  ;;  %s1206_s18 = smov 0   ;;  %s1208_s19 = smov 0  }
   0x8   :  { %s1210_s20 = smov 0   ;;  %s1212_s21 = smov 0  }
   0x9   :  { %s1214_s22 = smov 0   ;;  %s1216_s23 = smov 0  }
   0xa LB: > { %s870_s24 = sadd.s32 4294967295, %s1166_s23   ;;  %s871_s25 = sadd.s32 4294967294, %s1166_s23   ;;  %s1166_s23 = sphi %s1216_s23, %s25_s23   ;;  %s1162_s22 = sphi %s1214_s22, %s1494_s22   ;;  %s1158_s21 = sphi %s1212_s21, %s1493_s21   ;;  %s1154_s20 = sphi %s1210_s20, %s1492_s20   ;;  %s1150_s19 = sphi %s1208_s19, %s1491_s19   ;;  %s1146_s18 = sphi %s1206_s18, %s1490_s18  }
   0xb   : > { %s37_s26 = sadd.s32 1, %s1162_s22  ;;  %s46_s27 = sadd.s32 1, %s1154_s20 }
   0xc   : > { %p39_p0 = scmp.ge.s32.totalorder %s37_s26, 4  ;;  %p53_p1 = scmp.ne.s32.totalorder %s1154_s20, %s1150_s19 }
   0xd   : > { %p54_p2 = scmp.eq.s32.totalorder %s1166_s23, 0  ;;  %p59_p3 = scmp.ne.s32.totalorder %s1150_s19, %s1146_s18 }
   0xe   : > { %s1496_s26 = smov (%p39_p0, %s37_s26), 0  ;;  %p60_p5 = scmp.eq.s32.totalorder %s870_s24, 0 }
   0xf   : > { %p1247_p4 = por %p54_p2, %p53_p1  ;;  %s41_s29 = ssub.s32 %s1162_s22, %s1496_s26 }
  0x10   : > { %p165_p6 = scmp.eq.s32.totalorder %s870_s24, 3  ;;  %p44_p7 = scmp.eq.s32.totalorder %s41_s29, 0 }
  0x11   : > { %p1253_p8 = por %p60_p5, %p59_p3  ;;  %p171_p10 = scmp.eq.s32.totalorder %s871_s25, 3 }
  0x12   : > { %p1257_p9 = por %p165_p6, %p53_p1  ;;  %p949_p12 = scmp.lt.s32.totalorder %s1166_s23, 4 }
  0x13   : > { %s1479_s30 = scalar_select %p1253_p8, 1, 0 }
  0x14   : > { %s1480_s6 = scalar_select %p1257_p9, 1, 0 }
  0x15   : > { %s1262_s7 = scalar_select %p44_p7, %s1154_s20, %s46_s27  }
  0x16   : > { %p1264_p11 = por %p171_p10, %p59_p3  ;;  %s1270_s9 = sand.u32 1, %s1154_s20  }
  0x17   : > { %s874_s10 = sshll.u32 %s1270_s9, 5  ;;  %s902_s11 = sshll.u32 %s1162_s22, 9 }
  0x18   : > { %s1481_s8 = scalar_select %p1264_p11, 1, 0 }
  0x19   : > { %s1482_s0 = sld [smem:[#allocation11_spill]]  ;;  %s223_s15 = scalar_lea.vmem [#allocation2], %s874_s10 }
  0x1a   : > { %s232_s16 = sshll.u32 %s223_s15, 4  ;;  %p1283_p13 = pnand %p949_p12, %p1247_p4  ;;  %s1279_s16 = int_to_ptr.vmem [resolvable:$true] %s232_s16 }
  0x1b   : > { %s220_s24 = scalar_lea.sflag [#allocation3], %s1270_s9 }
  0x1c   : > { %p1022_p2 = pneg %p1283_p13 }
  0x1f   : > { %s1277_s14 = scalar_lea.hbm %s1482_s0, %s902_s11  ;;  %s1025_s28 = scalar_lea.hbm %s1482_s0, 2048 }
  0x20   : > { %s1020_s25 = scalar_lea.hbm %s1277_s14, 512  ;;  %p1026_p4 = scmp.lt.u32.totalorder %s1277_s14, %s1482_s0 }
  0x21   : > { %p1021_p1 = scmp.ne.s32.totalorder %s1277_s14, %s1020_s25  ;;  %p1027_p6 = scmp.lt.u32.totalorder %s1025_s28, %s1020_s25 }
  0x22   : > { %p1029_p10 = scmp.lt.u32.totalorder %s1020_s25, %s1277_s14 }
  0x23   : > { %p1023_p3 = pnand %p1022_p2, %p1021_p1  ;;  %p1028_p7 = por %p1027_p6, %p1026_p4 }
  0x25   : > { %p1024_p5 = pneg %p1023_p3  ;;  %p1030_p12 = por %p1029_p10, %p1028_p7 }
  0x27   : > { %p1031_p0 = pnand %p1030_p12, %p1024_p5 }
  0x29   : > { %1034 = shalt.err (!%p1031_p0)
}
  0x2a   : > { %s1035_s12 = scalar_lea.vmem %s1279_s16, 512  ;;  %s1168_s13 = smov [#allocation2]  }
  0x2b   : > { %p1036_p1 = scmp.ne.s32.totalorder %s1279_s16, %s1035_s12  ;;  %s1040_s15 = sshll.u32 %s1168_s13, 4  ;;  %s1041_s15 = int_to_ptr.vmem [resolvable:$false] %s1040_s15 }
  0x2c   : > { %s1042_s27 = scalar_lea.vmem %s1041_s15, 1024  ;;  %p1043_p9 = scmp.lt.s32.totalorder %s1279_s16, %s1041_s15 }
  0x2d   : > { %p1038_p3 = pnand %p1036_p1, %p1022_p2  ;;  %p1044_p4 = scmp.lt.s32.totalorder %s1042_s27, %s1035_s12 }
  0x2f   : > { %p1039_p11 = pneg %p1038_p3  ;;  %p1045_p6 = por %p1044_p4, %p1043_p9 }
  0x31   : > { %p1046_p7 = pnand %p1045_p6, %p1039_p11 }
  0x33   : > { %1049 = shalt.err (!%p1046_p7)
}
  0x34   : > { %s1169_s25 = smov 128   ;;  %s1170_s29 = smov 8  }
  0x35   : > { %941 = dma.hbm_to_vmem [thread:$0]  (!%p1283_p13), %s1277_s14, 512, %s1279_s16, %s220_s24, %s1169_s25, %s1169_s25, %s1170_s29  }
  0x36   : > { %p278_p0 = scmp.lt.s32.totalorder %s1166_s23, 5  ;;  %s877_s28 = sshll.u32 %s1270_s9, 3 }
  0x37   : > { %s878_s10 = sshll.u32 %s1162_s22, 7  ;;  %p1484_p9 = scmp.ge.s32.totalorder %s1166_s23, 1 }
  0x38   : > { %s1328_s15 = scalar_lea.hbm %s1471_s2, %s878_s10  ;;  %s253_s27 = scalar_lea.vmem [#allocation5], %s877_s28 }
  0x39   : > { %p1321_p11 = pnand %p1484_p9, %p278_p0  ;;  %s260_s0 = sshll.u32 %s253_s27, 4  ;;  %s261_s0 = int_to_ptr.vmem [resolvable:$true] %s260_s0 }
  0x3a   : > { %s250_s14 = scalar_lea.sflag [#allocation6], %s1270_s9  ;;  %s1050_s16 = scalar_lea.hbm %s1328_s15, 128 }
  0x3b   : > { %s1485_s11 = scalar_select %p1321_p11, 1, 0 }
  0x3c   : > { %p1051_p5 = scmp.ne.s32.totalorder %s1328_s15, %s1050_s16  ;;  %s1055_s29 = scalar_lea.hbm %s1471_s2, 512 }
  0x3d   : > { %p1056_p1 = scmp.lt.u32.totalorder %s1328_s15, %s1471_s2  ;;  %p1057_p3 = scmp.lt.u32.totalorder %s1055_s29, %s1050_s16 }
  0x3e   : > { %p1053_p10 = pnand %p1051_p5, %p1022_p2  ;;  %p1059_p6 = scmp.lt.u32.totalorder %s1050_s16, %s1328_s15 }
  0x3f   : > { %p1058_p4 = por %p1057_p3, %p1056_p1 }
  0x40   : > { %p1054_p12 = pneg %p1053_p10 }
  0x41   : > { %p1060_p7 = por %p1059_p6, %p1058_p4 }
  0x43   : > { %p1061_p0 = pnand %p1060_p7, %p1054_p12 }
  0x45   : > { %1064 = shalt.err (!%p1061_p0)
}
  0x46   : > { %s1065_s9 = scalar_lea.vmem %s261_s0, 128  ;;  %s1171_s28 = smov [#allocation5]  }
  0x47   : > { %p1066_p9 = scmp.ne.s32.totalorder %s261_s0, %s1065_s9  ;;  %s1070_s13 = sshll.u32 %s1171_s28, 4  ;;  %s1071_s13 = int_to_ptr.vmem [resolvable:$false] %s1070_s13 }
  0x48   : > { %s1072_s27 = scalar_lea.vmem %s1071_s13, 256  ;;  %p1073_p8 = scmp.lt.s32.totalorder %s261_s0, %s1071_s13 }
  0x49   : > { %p1068_p5 = pnand %p1066_p9, %p1022_p2  ;;  %p1074_p11 = scmp.lt.s32.totalorder %s1072_s27, %s1065_s9 }
  0x4b   : > { %p1069_p10 = pneg %p1068_p5  ;;  %p1075_p1 = por %p1074_p11, %p1073_p8 }
  0x4d   : > { %p1076_p3 = pnand %p1075_p1, %p1069_p10 }
  0x4f   : > { %1079 = shalt.err (!%p1076_p3)
}
  0x50   : > { %944 = dma.hbm_to_vmem [thread:$0]  (!%p1283_p13), %s1328_s15, 128, %s261_s0, %s250_s14  }
  0x51   : > { %p1486_p12 = scmp.ne.s32.totalorder %s1485_s11, 0 }
  0x52   : > { %s1353_s16 = sand.u32 (!%p1486_p12), 1, %s1150_s19   ;;  %p1487_p8 = scmp.ne.s32.totalorder (!%p1486_p12), %s1479_s30, 0 }
  0x53   : > { %282 = sbr.rel (%p1486_p12) target bundleno = 869 (0x365), region = 36  ;;  %s880_s24 = sshll.u32 (!%p1486_p12), %s1353_s16, 5 }
  0x54   : > { %s285_s25 = scalar_lea.sflag (!%p1486_p12), [#allocation3], %s1353_s16  ;;  %s288_s29 = scalar_lea.vmem (!%p1486_p12), [#allocation2], %s880_s24 }
  0x5a   : > { %1133 = dma.done.wait (%p1487_p8), %s285_s25, 512  }
  0x5b   : > { %1135 = vsyncadd (%p1487_p8), %s285_s25, 4294966784  ;;  %s881_s0 = sshll.u32 %s1353_s16, 3  ;;  %s294_s17 = scalar_lea.sflag [#allocation6], %s1353_s16 }
  0x5c   : > { %s1365_s11 = scalar_lea.vmem [#allocation5], %s881_s0 }
  0x5d   : > { %1137 = dma.done.wait (%p1487_p8), %s294_s17, 128  }
  0x5e   : > { %1139 = vsyncadd (%p1487_p8), %s294_s17, 4294967168  ;;  %p352_p13 = scmp.lt.s32.totalorder %s1158_s21, 3  ;;  %vm393_vm0 = vcmask 261120   ;;  %v379_v1 = vld [vmem:[%s288_s29] sm:$0xff]  ;;  %v380_v2 = vld [vmem:[%s288_s29 + $0x8] sm:$0xff]  ;;  %v1172_v13 = vmov 0  }
  0x5f   : > { %v389_v3 = vmul.f32 0.17677669, %v379_v1  ;;  %v390_v4 = vmul.f32 0.17677669, %v380_v2  ;;  %v381_v5 = vld [vmem:[%s288_s29 + $0x10] sm:$0xff]  ;;  %v382_v7 = vld [vmem:[%s288_s29 + $0x18] sm:$0xff] }
  0x60   : > { %s1373_s15 = scalar_select %p352_p13, %s1158_s21, 3  ;;  %v391_v6 = vmul.f32 0.17677669, %v381_v5  ;;  %v392_v8 = vmul.f32 0.17677669, %v382_v7  ;;  %vm514_vm7 = vcmask 64512  }
  0x61   : > { %918 = vmatprep.mubr.msk.f32.mxu0 %vm393_vm0, %v389_v3  ;;  %v384_v54 = vld [vmem:[%s1365_s11] sm:$0xff]  ;;  %s339_s17 = scalar_lea.vmem [#allocation7], %s880_s24  ;;  %p1488_p11 = scmp.ne.s32.totalorder %s1480_s6, 0 }
  0x62   : > { %s883_s14 = sshll.u32 %s1373_s15, 3  ;;  %924 = vmatprep.subr.mxu1 %v384_v54  ;;  %s904_s27 = sshll.u32 %s1373_s15, 5 }
  0x63   : > { %s355_s9 = scalar_lea.vmem %s1470_s1, %s883_s14  ;;  %s364_s13 = scalar_lea.vmem %s1472_s3, %s883_s14  ;;  %925 = vmatpush3.msra.mxu1 %v384_v54 }
  0x64   : > { %v383_v0 = vld [vmem:[%s355_s9] sm:$0xff]  ;;  %s375_s0 = scalar_lea.vmem %s1474_s5, %s904_s27  ;;  %s689_s11 = sshll.u32 %s339_s17, 4  ;;  %s1413_s11 = int_to_ptr.vmem [resolvable:$true] %s689_s11 }
  0x65   : > { %916 = vmatprep.subr.msk.mxu0 %vm393_vm0, %v383_v0  ;;  %v386_v9 = vld [vmem:[%s364_s13 + $0x2] sm:$0x3]  ;;  %v385_v10 = vld [vmem:[%s364_s13] sm:$0x3]  ;;  %v388_v11 = vld [vmem:[%s364_s13 + $0x6] sm:$0x3] }
  0x66   : > { %917 = vmatpush3.xpose.msk.msra.mxu0 %vm393_vm0, %v383_v0  ;;  %vm495_vm1 = vnez %v386_v9  ;;  %vm494_vm2 = vnez %v385_v10  ;;  %v387_v12 = vld [vmem:[%s364_s13 + $0x4] sm:$0x3]  ;;  %vm497_vm3 = vnez %v388_v11  ;;  %s905_s15 = sshll.u32 %s1158_s21, 9  ;;  %s665_s21 = scalar_lea.sflag [#allocation4], %s1353_s16 }
  0x67   : > { %v499_v14 = vsel %vm495_vm1, 16843009, %v1172_v13  ;;  %v498_v15 = vsel %vm494_vm2, 16843009, %v1172_v13  ;;  %vm496_vm4 = vnez %v387_v12  ;;  %v501_v18 = vsel %vm497_vm3, 16843009, %v1172_v13  ;;  %s1419_s12 = scalar_lea.hbm %s1473_s4, %s905_s15 }
  0x68   : > { %v503_v16 = vunpack.c.0.s8 %v499_v14  ;;  %v502_v17 = vunpack.c.0.s8 %v498_v15  ;;  %v500_v19 = vsel %vm496_vm4, 16843009, %v1172_v13  ;;  %v505_v20 = vunpack.c.0.s8 %v501_v18  ;;  %s1080_s24 = scalar_lea.vmem %s1413_s11, 512  ;;  %s1173_s9 = smov [#allocation7]  }
  0x69   : > { %919 = vmatmul.mubr.msk.f32.vlgmr.msra.gmra.mrb[0].mxu0 %vm393_vm0, %v390_v4  ;;  %v504_v21 = vunpack.c.0.s8 %v500_v19  ;;  %p1081_p2 = scmp.ne.s32.totalorder %s1413_s11, %s1080_s24  ;;  %s1084_s30 = sshll.u32 %s1173_s9, 4  ;;  %s1085_s30 = int_to_ptr.vmem [resolvable:$false] %s1084_s30 }
  0x6a   : > { %921 = vmatprep.mubr.msk.f32.mxu0 %vm393_vm0, %v391_v6  ;;  %vm507_vm5 = vcmp.ne.s32.totalorder %v503_v16, 0  ;;  %vm506_vm6 = vcmp.ne.s32.totalorder %v502_v17, 0  ;;  %vm509_vm8 = vcmp.ne.s32.totalorder %v505_v20, 0  ;;  %s1086_s28 = scalar_lea.vmem %s1085_s30, 1024  ;;  %p1087_p7 = scmp.lt.s32.totalorder %s1413_s11, %s1085_s30 }
  0x6b   : > { %vm508_vm9 = vcmp.ne.s32.totalorder %v504_v21, 0  ;;  %p1082_p4 = pnand %p1081_p2, %p1488_p11  ;;  %p1088_p0 = scmp.lt.s32.totalorder %s1086_s28, %s1080_s24 }
  0x6d   : > { %922 = vmatmul.mubr.msk.f32.gmra.mrb[2].mxu0 %vm393_vm0, %v392_v8  ;;  %p1083_p6 = pneg %p1082_p4  ;;  %p1089_p9 = por %p1088_p0, %p1087_p7 }
  0x6f   : > { %p1090_p5 = pnand %p1089_p9, %p1083_p6 }
 0x13c   : > { %v920_v22 = vpop.f32.mrb[0].mxu0 }
 0x13d   : > { %v511_v23 = vsel %vm507_vm5, -1e+09, %v920_v22  ;;  %v475_v24 = vpop.f32.mrb[1].mxu0 }
 0x13e   : > { %v510_v25 = vsel %vm506_vm6, -1e+09, %v475_v24  ;;  %v518_v31 = vsel %vm514_vm7, %v511_v23, -inf }
 0x13f   : > { %v515_v26 = vsel %vm514_vm7, %v510_v25, -inf }
 0x140   : > { %516 = vmax.xlane.f32.xlu0 %v515_v26  ;;  %v923_v27 = vpop.f32.mrb[2].mxu0 }
 0x141   : > { %v513_v28 = vsel %vm509_vm8, -1e+09, %v923_v27  ;;  %v485_v29 = vpop.f32.mrb[3].mxu0 }
 0x142   : > { %v512_v30 = vsel %vm508_vm9, -1e+09, %v485_v29  ;;  %v524_v33 = vsel %vm514_vm7, %v513_v28, -inf }
 0x143   : > { %v521_v32 = vsel %vm514_vm7, %v512_v30, -inf }
 0x144   : > { %519 = vmax.xlane.f32.xlu0 %v518_v31  ;;  %522 = vmax.xlane.f32.xlu1 %v521_v32 }
 0x148   : > { %525 = vmax.xlane.f32.xlu1 %v524_v33 }
 0x1cd   : > { %v517_v34 = vpop.xlane.xlu0 %516 }
 0x1ce   : > { %v527_v35 = vsub.f32 %v510_v25, %v517_v34 }
 0x1d0   : > { %v531_v36 = vmul.f32 1.442695, %v527_v35 }
 0x1d1   : > { %v520_v37 = vpop.xlane.xlu0 %519  ;;  %v523_v38 = vpop.xlane.xlu1 %522 }
 0x1d2   : > { %1004 = vpow2.f32 %v531_v36  ;;  %v528_v39 = vsub.f32 %v511_v23, %v520_v37  ;;  %v529_v40 = vsub.f32 %v512_v30, %v523_v38 }
 0x1d4   : > { %v533_v41 = vmul.f32 1.442695, %v528_v39  ;;  %v535_v42 = vmul.f32 1.442695, %v529_v40 }
 0x1d5   : > { %v526_v43 = vpop.xlane.xlu1 %525 }
 0x1d6   : > { %1006 = vpow2.f32 %v533_v41  ;;  %v530_v44 = vsub.f32 %v513_v28, %v526_v43 }
 0x1d7   : > { %1008 = vpow2.f32 %v535_v42 }
 0x1d8   : > { %v537_v45 = vmul.f32 1.442695, %v530_v44 }
 0x1da   : > { %1010 = vpow2.f32 %v537_v45 }
 0x1dc   : > { %v1005_v46 = vpop.eup %1004 }
 0x1dd   : > { %v539_v47 = vsel %vm514_vm7, %v1005_v46, 0.0 }
 0x1de   : > { %540 = vadd.xlane.f32.xlu0 %v539_v47 }
 0x1e0   : > { %v1007_v48 = vpop.eup %1006 }
 0x1e1   : > { %v1009_v49 = vpop.eup %1008  ;;  %v542_v50 = vsel %vm514_vm7, %v1007_v48, 0.0 }
 0x1e2   : > { %543 = vadd.xlane.f32.xlu1 %v542_v50  ;;  %v545_v51 = vsel %vm514_vm7, %v1009_v49, 0.0 }
 0x1e3   : > { %546 = vadd.xlane.f32.xlu0 %v545_v51 }
 0x1e4   : > { %v1011_v52 = vpop.eup %1010 }
 0x1e5   : > { %v548_v53 = vsel %vm514_vm7, %v1011_v52, 0.0 }
 0x1e6   : > { %549 = vadd.xlane.f32.xlu1 %v548_v53 }
 0x26b   : > { %v541_v55 = vpop.xlane.xlu0 %540 }
 0x26c   : > { %1012 = vrcp.f32 %v541_v55 }
 0x26f   : > { %v544_v56 = vpop.xlane.xlu1 %543 }
 0x270   : > { %v547_v57 = vpop.xlane.xlu0 %546  ;;  %1014 = vrcp.f32 %v544_v56 }
 0x271   : > { %1016 = vrcp.f32 %v547_v57 }
 0x273   : > { %v550_v58 = vpop.xlane.xlu1 %549 }
 0x274   : > { %1018 = vrcp.f32 %v550_v58 }
 0x276   : > { %v1013_v59 = vpop.eup %1012 }
 0x277   : > { %v555_v60 = vmul.f32 %v1013_v59, %v1005_v46 }
 0x279   : > { %926 = vmatprep.mubr.msk.f32.mxu1 %vm514_vm7, %v555_v60  ;;  %656 = vst.msk [vmem:[%s375_s0] sm:$0xff] %vm514_vm7, %v555_v60 }
 0x27a   : > { %v1015_v61 = vpop.eup %1014 }
 0x27b   : > { %v1017_v62 = vpop.eup %1016  ;;  %v556_v63 = vmul.f32 %v1015_v61, %v1007_v48 }
 0x27c   : > { %v557_v0 = vmul.f32 %v1017_v62, %v1009_v49 }
 0x27d   : > { %927 = vmatmul.mubr.msk.f32.vlgmr.msra.gmra.mrb[0].mxu1 %vm514_vm7, %v556_v63  ;;  %657 = vst.msk [vmem:[%s375_s0 + $0x8] sm:$0xff] %vm514_vm7, %v556_v63 }
 0x27e   : > { %v1019_v1 = vpop.eup %1018  ;;  %929 = vmatprep.mubr.msk.f32.mxu1 %vm514_vm7, %v557_v0  ;;  %658 = vst.msk [vmem:[%s375_s0 + $0x10] sm:$0xff] %vm514_vm7, %v557_v0 }
 0x27f   : > { %v558_v2 = vmul.f32 %v1019_v1, %v1011_v52 }
 0x281   : > { %930 = vmatmul.mubr.msk.f32.gmra.mrb[2].mxu1 %vm514_vm7, %v558_v2  ;;  %659 = vst.msk [vmem:[%s375_s0 + $0x18] sm:$0xff] %vm514_vm7, %v558_v2 }
 0x350   : > { %v928_v3 = vpop.f32.mrb[0].mxu1 }
 0x351   : > { %661 = vst.msk [vmem:[%s339_s17 + $0x8] sm:$0xff] %vm393_vm0, %v928_v3  ;;  %v637_v4 = vpop.f32.mrb[1].mxu1 }
 0x352   : > { %660 = vst.msk [vmem:[%s339_s17] sm:$0xff] %vm393_vm0, %v637_v4 }
 0x354   : > { %v931_v5 = vpop.f32.mrb[2].mxu1 }
 0x355   : > { %663 = vst.msk [vmem:[%s339_s17 + $0x18] sm:$0xff] %vm393_vm0, %v931_v5  ;;  %v647_v6 = vpop.f32.mrb[3].mxu1 }
 0x356   : > { %662 = vst.msk [vmem:[%s339_s17 + $0x10] sm:$0xff] %vm393_vm0, %v647_v6 }
 0x357   : > { %1093 = shalt.err (!%p1090_p5)
}
 0x358   : > { %s1094_s13 = scalar_lea.hbm %s1419_s12, 512  ;;  %s1098_s29 = scalar_lea.hbm %s1473_s4, 2048 }
 0x359   : > { %p1095_p10 = scmp.ne.s32.totalorder %s1419_s12, %s1094_s13  ;;  %p1099_p12 = scmp.lt.u32.totalorder %s1419_s12, %s1473_s4 }
 0x35a   : > { %p1100_p8 = scmp.lt.u32.totalorder %s1098_s29, %s1094_s13  ;;  %p1102_p2 = scmp.lt.u32.totalorder %s1094_s13, %s1419_s12 }
 0x35b   : > { %p1096_p1 = pnand %p1095_p10, %p1488_p11 }
 0x35c   : > { %p1101_p13 = por %p1100_p8, %p1099_p12 }
 0x35d   : > { %p1097_p3 = pneg %p1096_p1 }
 0x35e   : > { %p1103_p4 = por %p1102_p2, %p1101_p13 }
 0x360   : > { %p1104_p6 = pnand %p1103_p4, %p1097_p3 }
 0x362   : > { %1107 = shalt.err (!%p1104_p6)
}
 0x363   : > { %s1174_s15 = smov 128   ;;  %s1175_s14 = smov 8  }
 0x364   : > { %936 = dma.vmem_to_hbm [thread:$0]  (%p1488_p11), %s1413_s11, 512, %s1419_s12, %s665_s21, %s1174_s15, %s1174_s15, %s1175_s14  }
 0x365 PF: > { %p950_p7 = scmp.ge.s32.totalorder %s1166_s23, 2  ;;  %s708_s10 = sand.u32 1, %s1146_s18  }
 0x366   : > { %p1489_p0 = scmp.ne.s32.totalorder %s1481_s8, 0  ;;  %s709_s24 = scalar_lea.sflag [#allocation4], %s708_s10 }
 0x368   : > { %p946_p9 = pnand %p950_p7, %p1489_p0 }
 0x36a   : > { %1141 = dma.done.wait (!%p946_p9), %s709_s24, 512  }
 0x36b   : > { %1143 = vsyncadd (!%p946_p9), %s709_s24, 4294966784  ;;  %s25_s23 = sadd.s32 1, %s1166_s23   ;;  %s1490_s18 = smov %s1150_s19 }
 0x36c   : > { %p22_p5 = scmp.ge.s32.totalorder %s25_s23, 6   ;;  %s1491_s19 = smov %s1154_s20 }
 0x36d   : > { %s1492_s20 = smov %s1262_s7  ;;  %s1493_s21 = smov %s1162_s22 }
 0x36e   : > { %s1494_s22 = smov %s1496_s26  ;;  %24 = sbr.rel (!%p22_p5) target bundleno = 10 (0xa), region = 112 }
 0x375   :  { %726 = vsyncpa [#allocation3], 1 }
 0x376   :  { %728 = vsyncpa [#allocation3 + $0x1], 1 }
 0x377   :  { %729 = vsyncpa [#allocation6], 1 }
 0x378   :  { %731 = vsyncpa [#allocation6 + $0x1], 1 }
 0x379   :  { %732 = vsyncpa [#allocation4], 1 }
 0x37a   :  { %734 = vsyncpa [#allocation4 + $0x1], 1 }

</bundles_post_ra>
